<compile_context>
chip_gen: v5e
topology: v5e:2x2
jax: 0.10.0
libtpu: 0.0.40
codegen_flags: <defaults>
</compile_context>

<pallas_src>
import functools

import jax
import jax.numpy as jnp
from jax.experimental import pallas as pl
from jax.experimental.pallas import tpu as pltpu

HIDDEN = 128      # fixed by the module
LANE = 128        # TPU lane width
SUBLANE = 16      # bf16-friendly sublane multiple
NEG_BIG = -1e30   # effectively -inf for softmax masking


def _round_up(n: int, m: int) -> int:
    return pl.cdiv(n, m) * m


def policy_kernel(x_ref, w1_ref, b1_ref, w2_ref, b2_ref, out_ref, *, action_dim):
    # x_ref: [TB, S] bf16, w1_ref: [S, H] bf16, b1_ref: [1, H] f32,
    # w2_ref: [H, A_pad] bf16, b2_ref: [1, A_pad] f32, out_ref: [TB, A_pad] f32
    x = x_ref[...]

    # Linear(state_dim -> 128) + ReLU (MXU bf16 dot, f32 accumulate/epilogue)
    h = jnp.dot(x, w1_ref[...], preferred_element_type=jnp.float32) + b1_ref[...]
    h = jnp.maximum(h, 0.0)

    # Linear(128 -> action_dim), padded out to A_pad lanes (zero weight cols)
    logits = jnp.dot(h.astype(jnp.bfloat16), w2_ref[...],
                     preferred_element_type=jnp.float32) + b2_ref[...]

    # Mask the padded action lanes so softmax is over the logical action_dim.
    lane = jax.lax.broadcasted_iota(jnp.int32, logits.shape, 1)
    logits = jnp.where(lane < action_dim, logits, NEG_BIG)

    # Numerically-stable softmax over dim=-1; reciprocal goes to the EUP.
    m = jnp.max(logits, axis=-1, keepdims=True)
    e = jnp.exp(logits - m)
    denom = jnp.sum(e, axis=-1, keepdims=True)
    out_ref[...] = (e * pl.reciprocal(denom, approx=True)).astype(out_ref.dtype)


def policy_forward(x, w1, b1, w2, b2, *, block_b=512):
    """x: [B, S] f32; w1: [S, H]; b1: [H]; w2: [H, A]; b2: [A]. Returns [B, A] f32."""
    B, S = x.shape
    H, A = w2.shape

    A_pad = _round_up(A, LANE)                       # lane-dense output
    TB = min(block_b, _round_up(B, SUBLANE))         # batch tile (multiple of 16)
    B_pad = _round_up(B, TB)
    grid = (B_pad // TB,)

    # One-time padding / casts outside the kernel (bf16 halves x/W DMA bytes).
    x_p = jnp.pad(x.astype(jnp.bfloat16), ((0, B_pad - B), (0, 0)))
    w1_b = w1.astype(jnp.bfloat16)
    w2_p = jnp.pad(w2.astype(jnp.bfloat16), ((0, 0), (0, A_pad - A)))
    b1_f = b1.reshape(1, H).astype(jnp.float32)
    b2_p = jnp.pad(b2.reshape(1, A).astype(jnp.float32), ((0, 0), (0, A_pad - A)))

    kernel = functools.partial(policy_kernel, action_dim=A)

    out = pl.pallas_call(
        kernel,
        out_shape=jax.ShapeDtypeStruct((B_pad, A_pad), jnp.float32),
        grid_spec=pltpu.PrefetchScalarGridSpec(
            num_scalar_prefetch=0,
            grid=grid,
            in_specs=[
                pl.BlockSpec((TB, S), lambda i: (i, 0)),       # x streams over batch
                pl.BlockSpec((S, H), lambda i: (0, 0)),        # weights stay resident
                pl.BlockSpec((1, H), lambda i: (0, 0)),
                pl.BlockSpec((H, A_pad), lambda i: (0, 0)),
                pl.BlockSpec((1, A_pad), lambda i: (0, 0)),
            ],
            out_specs=pl.BlockSpec((TB, A_pad), lambda i: (i, 0)),
        ),
        compiler_params=pltpu.CompilerParams(
            dimension_semantics=("parallel",)),
    )(x_p, w1_b, b1_f, w2_p, b2_p)

    return out[:B, :A]


def init_params(key, state_dim, action_dim):
    # Deterministic synthetic init (uniform, roughly matching torch's
    # default Linear init scale: U(-1/sqrt(fan_in), 1/sqrt(fan_in))).
    k1, k2, k3, k4 = jax.random.split(key, 4)
    lim1 = 1.0 / jnp.sqrt(state_dim)
    lim2 = 1.0 / jnp.sqrt(HIDDEN)
    w1 = jax.random.uniform(k1, (state_dim, HIDDEN), jnp.float32, -lim1, lim1)
    b1 = jax.random.uniform(k2, (HIDDEN,), jnp.float32, -lim1, lim1)
    w2 = jax.random.uniform(k3, (HIDDEN, action_dim), jnp.float32, -lim2, lim2)
    b2 = jax.random.uniform(k4, (action_dim,), jnp.float32, -lim2, lim2)
    return w1, b1, w2, b2


if __name__ == "__main__":
    key = jax.random.PRNGKey(0)
    batch, state_dim, action_dim = 2, 16, 8

    k_x, k_p = jax.random.split(key)
    x = jax.random.normal(k_x, (batch, state_dim), jnp.float32)
    w1, b1, w2, b2 = init_params(k_p, state_dim, action_dim)

    probs = policy_forward(x, w1, b1, w2, b2)
    jax.block_until_ready(probs)

    # Reference in plain JAX with the same bf16 quantization on the MXU operands.
    xb, w1b, w2b = (t.astype(jnp.bfloat16) for t in (x, w1, w2))
    h_ref = jnp.maximum(
        jnp.dot(xb, w1b, preferred_element_type=jnp.float32) + b1[None, :], 0.0)
    logits_ref = jnp.dot(h_ref.astype(jnp.bfloat16), w2b,
                         preferred_element_type=jnp.float32) + b2[None, :]
    ref = jax.nn.softmax(logits_ref, axis=-1)

    assert probs.shape == (batch, action_dim)
    # approx reciprocal + bf16 dots -> slightly looser tolerance than pure f32
    assert jnp.allclose(probs, ref, atol=2e-3, rtol=2e-2)
    assert jnp.allclose(jnp.sum(probs, axis=-1), 1.0, atol=3e-3)

    print("KERNEL_OK")
</pallas_src>

<mosaic_0001>
module attributes {stable_mosaic.version = 11 : i64} {
  func.func @policy_kernel(%arg0: i32, %arg1: memref<16x16xbf16, #tpu.memory_space<vmem>>, %arg2: memref<16x128xbf16, #tpu.memory_space<vmem>>, %arg3: memref<1x128xf32, #tpu.memory_space<vmem>>, %arg4: memref<128x128xbf16, #tpu.memory_space<vmem>>, %arg5: memref<1x128xf32, #tpu.memory_space<vmem>>, %arg6: memref<16x128xf32, #tpu.memory_space<vmem>>) attributes {dimension_semantics = [#tpu.dimension_semantics<parallel>], iteration_bounds = array<i64: 1>, scalar_prefetch = 0 : i64, scratch_operands = 0 : i64, tpu.core_type = #tpu.core_type<tc>, window_params = [{transform_indices = @transform_0, window_bounds = array<i64: 16, 16>}, {pipeline_mode = #tpu.pipeline_mode<synchronous>, transform_indices = @transform_1, window_bounds = array<i64: 16, 128>}, {pipeline_mode = #tpu.pipeline_mode<synchronous>, transform_indices = @transform_2, window_bounds = array<i64: 1, 128>}, {pipeline_mode = #tpu.pipeline_mode<synchronous>, transform_indices = @transform_3, window_bounds = array<i64: 128, 128>}, {pipeline_mode = #tpu.pipeline_mode<synchronous>, transform_indices = @transform_4, window_bounds = array<i64: 1, 128>}, {transform_indices = @transform_5, window_bounds = array<i64: 16, 128>}]} {
    %c0 = arith.constant 0 : index
    %c0_0 = arith.constant 0 : index
    %0 = vector.load %arg1[%c0, %c0_0] : memref<16x16xbf16, #tpu.memory_space<vmem>>, vector<16x16xbf16>
    %c0_1 = arith.constant 0 : index
    %c0_2 = arith.constant 0 : index
    %1 = vector.load %arg2[%c0_1, %c0_2] : memref<16x128xbf16, #tpu.memory_space<vmem>>, vector<16x128xbf16>
    %cst = arith.constant dense<0.000000e+00> : vector<16x128xf32>
    %2 = tpu.matmul %0, %1, %cst {dimension_numbers = #tpu.dot_dimension_numbers<[1], [0], [0], [1], [0, 0, 1, 1], [], []>} : vector<16x16xbf16>, vector<16x128xbf16>, vector<16x128xf32> -> vector<16x128xf32>
    %c0_3 = arith.constant 0 : index
    %c0_4 = arith.constant 0 : index
    %3 = vector.load %arg3[%c0_3, %c0_4] : memref<1x128xf32, #tpu.memory_space<vmem>>, vector<1x128xf32>
    %4 = vector.broadcast %3 : vector<1x128xf32> to vector<16x128xf32>
    %5 = arith.addf %2, %4 : vector<16x128xf32>
    %cst_5 = arith.constant 0.000000e+00 : f32
    %6 = vector.broadcast %cst_5 : f32 to vector<16x128xf32>
    %7 = arith.maximumf %5, %6 : vector<16x128xf32>
    %8 = arith.truncf %7 : vector<16x128xf32> to vector<16x128xbf16>
    %c0_6 = arith.constant 0 : index
    %c0_7 = arith.constant 0 : index
    %9 = vector.load %arg4[%c0_6, %c0_7] : memref<128x128xbf16, #tpu.memory_space<vmem>>, vector<128x128xbf16>
    %cst_8 = arith.constant dense<0.000000e+00> : vector<16x128xf32>
    %10 = tpu.matmul %8, %9, %cst_8 {dimension_numbers = #tpu.dot_dimension_numbers<[1], [0], [0], [1], [0, 0, 1, 1], [], []>} : vector<16x128xbf16>, vector<128x128xbf16>, vector<16x128xf32> -> vector<16x128xf32>
    %c0_9 = arith.constant 0 : index
    %c0_10 = arith.constant 0 : index
    %11 = vector.load %arg5[%c0_9, %c0_10] : memref<1x128xf32, #tpu.memory_space<vmem>>, vector<1x128xf32>
    %12 = vector.broadcast %11 : vector<1x128xf32> to vector<16x128xf32>
    %13 = arith.addf %10, %12 : vector<16x128xf32>
    %14 = tpu.iota {dimensions = array<i32: 1>} : vector<16x128xi32>
    %c8_i32 = arith.constant 8 : i32
    %15 = vector.broadcast %c8_i32 : i32 to vector<16x128xi32>
    %16 = arith.cmpi slt, %14, %15 : vector<16x128xi32>
    %cst_11 = arith.constant -1.000000e+30 : f32
    %17 = vector.broadcast %cst_11 : f32 to vector<16x128xf32>
    %18 = arith.select %16, %13, %17 : vector<16x128xi1>, vector<16x128xf32>
    %cst_12 = arith.constant dense<0xFF800000> : vector<16xf32>
    %19 = vector.multi_reduction <maximumf>, %18, %cst_12 [1] : vector<16x128xf32> to vector<16xf32>
    %20 = vector.shape_cast %19 : vector<16xf32> to vector<16x1xf32>
    %21 = vector.broadcast %20 : vector<16x1xf32> to vector<16x128xf32>
    %22 = arith.subf %18, %21 : vector<16x128xf32>
    %23 = math.exp %22 : vector<16x128xf32>
    %cst_13 = arith.constant dense<0.000000e+00> : vector<16xf32>
    %24 = vector.multi_reduction <add>, %23, %cst_13 [1] : vector<16x128xf32> to vector<16xf32>
    %25 = vector.shape_cast %24 : vector<16xf32> to vector<16x1xf32>
    %26 = tpu.reciprocal %25 {approx = true} : vector<16x1xf32> -> vector<16x1xf32>
    %27 = vector.broadcast %26 : vector<16x1xf32> to vector<16x128xf32>
    %28 = arith.mulf %23, %27 : vector<16x128xf32>
    %c0_14 = arith.constant 0 : index
    %c0_15 = arith.constant 0 : index
    %29 = vector.load %arg6[%c0_14, %c0_15] : memref<16x128xf32, #tpu.memory_space<vmem>>, vector<16x128xf32>
    tpu.vector_store %arg6[%c0_14, %c0_15], %28 {strides = array<i32>} : memref<16x128xf32, #tpu.memory_space<vmem>>, vector<16x128xf32>,
    return
  }
  func.func @transform_0(%arg0: i32) -> (i32, i32) {
    %c0_i32 = arith.constant 0 : i32
    %c0_i32_0 = arith.constant 0 : i32
    return %arg0, %c0_i32 : i32, i32
  }
  func.func @transform_1(%arg0: i32) -> (i32, i32) {
    %c0_i32 = arith.constant 0 : i32
    %c0_i32_0 = arith.constant 0 : i32
    %c0_i32_1 = arith.constant 0 : i32
    return %c0_i32, %c0_i32_0 : i32, i32
  }
  func.func @transform_2(%arg0: i32) -> (i32, i32) {
    %c0_i32 = arith.constant 0 : i32
    %c0_i32_0 = arith.constant 0 : i32
    %c0_i32_1 = arith.constant 0 : i32
    return %c0_i32, %c0_i32_0 : i32, i32
  }
  func.func @transform_3(%arg0: i32) -> (i32, i32) {
    %c0_i32 = arith.constant 0 : i32
    %c0_i32_0 = arith.constant 0 : i32
    %c0_i32_1 = arith.constant 0 : i32
    return %c0_i32, %c0_i32_0 : i32, i32
  }
  func.func @transform_4(%arg0: i32) -> (i32, i32) {
    %c0_i32 = arith.constant 0 : i32
    %c0_i32_0 = arith.constant 0 : i32
    %c0_i32_1 = arith.constant 0 : i32
    return %c0_i32, %c0_i32_0 : i32, i32
  }
  func.func @transform_5(%arg0: i32) -> (i32, i32) {
    %c0_i32 = arith.constant 0 : i32
    %c0_i32_0 = arith.constant 0 : i32
    return %arg0, %c0_i32 : i32, i32
  }
}

</mosaic_0001>

<bundles_post_ra>
// kernel: tpu_custom_call.1
= control target key start
LH: loop header
LB: loop body
LE: loop exit
PB: predicated region body
PF: predicated region fallthrough
CT: control target
= control target key end

     0   :  { %10 = vsyncpa [#allocation3], 0  ;;  %s463_s0 = inlined_call_operand.hbm [shape: bf16[16,16], index: 0, kind: input, shape index: {}]   ;;  %s464_s1 = inlined_call_operand.hbm [shape: bf16[16,128], index: 1, kind: input, shape index: {}]   ;;  %s465_s2 = inlined_call_operand.vmem [shape: f32[1,128], index: 2, kind: input, shape index: {}]   ;;  %s466_s3 = inlined_call_operand.hbm [shape: bf16[128,128], index: 3, kind: input, shape index: {}]   ;;  %s467_s4 = inlined_call_operand.vmem [shape: f32[1,128], index: 4, kind: input, shape index: {}]   ;;  %s468_s5 = inlined_call_operand.hbm [shape: f32[16,128], index: 5, kind: output, shape index: {}]  }
   0x1   :  { %11 = vsyncpa [#allocation6], 0 }
   0x2   :  { %12 = vsyncpa [#allocation4], 0  ;;  %s30_s20 = sshll.u32 %s464_s1, 4  ;;  %s407_s21 = smov [#allocation5]   ;;  %s31_s20 = int_to_ptr.hbm [resolvable:$true] %s30_s20 }
   0x3   :  { %s32_s22 = sshll.u32 %s407_s21, 4  ;;  %s17_s25 = sshll.u32 %s463_s0, 4  ;;  %s33_s22 = int_to_ptr.vmem [resolvable:$true] %s32_s22  ;;  %s18_s25 = int_to_ptr.hbm [resolvable:$true] %s17_s25 }
   0x4   :  { %s408_s26 = smov 64   ;;  %s409_s27 = smov 4  }
   0x5   :  { %38 = dma.hbm_to_vmem [thread:$0]  %s31_s20, 128, %s33_s22, [#allocation6], %s408_s26, %s408_s26, %s409_s27  }
   0x6   :  { %s410_s28 = smov [#allocation2]   ;;  %s45_s7 = sshll.u32 %s466_s3, 4  ;;  %s46_s7 = int_to_ptr.hbm [resolvable:$true] %s45_s7 }
   0x7   :  { %s19_s29 = sshll.u32 %s410_s28, 4  ;;  %s411_s1 = smov [#allocation7]   ;;  %s20_s29 = int_to_ptr.vmem [resolvable:$true] %s19_s29 }
   0x8   :  { %25 = dma.hbm_to_vmem [thread:$0]  %s18_s25, 128, %s20_s29, [#allocation3], %s408_s26, %s408_s26, %s409_s27  }
   0x9   :  { %s47_s8 = sshll.u32 %s411_s1, 4  ;;  %s48_s8 = int_to_ptr.vmem [resolvable:$true] %s47_s8 }
   0xa   :  { %53 = dma.hbm_to_vmem [thread:$0]  %s46_s7, 1024, %s48_s8, [#allocation6], %s408_s26, %s408_s26, %s409_s27  }
   0xb   :  { %401 = dma.done.wait [#allocation3], 128  }
   0xc   :  { %402 = vsyncadd [#allocation3], 4294967168 }
   0xd   :  { %403 = dma.done.wait [#allocation6], 1152  }
   0xe   :  { %404 = vsyncadd [#allocation6], 4294966144  ;;  %v278_v0 = vld [vmem:[#allocation5] sm:$0xff]  ;;  %v277_v2 = vld [vmem:[#allocation2] sm:$0xff]  ;;  %vm88_vm0 = vcmask 130048   ;;  %v191_v18 = vlaneseq  ;;  %s222_s13 = sshll.u32 %s468_s5, 4  ;;  %s223_s13 = int_to_ptr.hbm [resolvable:$true] %s222_s13 }
   0xf   :  { %v286_v1 = vld [vmem:[#allocation7 + $0x38] sm:$0xff]  ;;  %99 = vmatpush.bf16.msra.mxu0 %v278_v0  ;;  %v285_v3 = vld [vmem:[#allocation7 + $0x30] sm:$0xff]  ;;  %v284_v4 = vld [vmem:[#allocation7 + $0x28] sm:$0xff]  ;;  %s413_s14 = smov 128   ;;  %s414_s15 = smov 8  }
  0x10   :  { %177 = vmatpush.bf16.msra.mxu1 %v286_v1  ;;  %v283_v5 = vld [vmem:[#allocation7 + $0x20] sm:$0xff]  ;;  %v282_v6 = vld [vmem:[#allocation7 + $0x18] sm:$0xff]  ;;  %v281_v7 = vld [vmem:[#allocation7 + $0x10] sm:$0xff]  ;;  %v192_v19 = vand.u32 127, %v191_v18 }
  0x11   :  { %v280_v8 = vld [vmem:[#allocation7 + $0x8] sm:$0xff]  ;;  %v279_v9 = vld [vmem:[#allocation7] sm:$0xff]  ;;  %v295_v11 = vld [vmem:[%s465_s2] ss:$0 sm:$0xff]  ;;  %s412_s2 = smov [#allocation8]  }
  0x12   :  { %244 = vmatmul.msk.bf16.vlgmr.msra.gmra.mxu0 %vm88_vm0, %v277_v2  ;;  %v296_v20 = vld [vmem:[%s467_s4] ss:$0 sm:$0xff]  ;;  %vm193_vm1 = vcmp.lt.s32.totalorder %v192_v19, 8  ;;  %s220_s4 = sshll.u32 %s412_s2, 4  ;;  %s221_s4 = int_to_ptr.vmem [resolvable:$true] %s220_s4 }
  0x14   :  { %178 = vmatpush.bf16.msra.mxu1 %v285_v3 }
  0x18   :  { %179 = vmatpush.bf16.msra.mxu1 %v284_v4 }
  0x1c   :  { %180 = vmatpush.bf16.msra.mxu1 %v283_v5 }
  0x20   :  { %181 = vmatpush.bf16.msra.mxu1 %v282_v6 }
  0x24   :  { %182 = vmatpush.bf16.msra.mxu1 %v281_v7 }
  0x28   :  { %183 = vmatpush.bf16.msra.mxu1 %v280_v8 }
  0x2c   :  { %184 = vmatpush.bf16.msra.mxu1 %v279_v9 }
  0x8f   :  { %v101_v10 = vpop.f32.mrf.mxu0 }
  0x90   :  { %v102_v12 = vadd.f32 %v295_v11, %v101_v10 }
  0x92   :  { %v106_v15 = vmax.f32 %v102_v12, 0.0 }
  0x97   :  { %v103_v13 = vpop.f32.mrf.mxu0 }
  0x98   :  { %v104_v14 = vadd.f32 %v295_v11, %v103_v13 }
  0x9a   :  { %v107_v16 = vmax.f32 %v104_v14, 0.0 }
  0x9c   :  { %v108_v17 = vpack.c.bf16 %v107_v16, %v106_v15 }
  0x9e   :  { %185 = vmatmul.bf16.vlgmr.msra.gmra.mxu1 %v108_v17 }
 0x11b   :  { %v186_v21 = vpop.f32.mrf.mxu1 }
 0x11c   :  { %v187_v22 = vadd.f32 %v296_v20, %v186_v21 }
 0x11e   :  { %v194_v23 = vsel %vm193_vm1, %v187_v22, -1e+30 }
 0x11f   :  { %196 = vmax.xlane.f32.xlu0 %v194_v23 }
 0x123   :  { %v188_v24 = vpop.f32.mrf.mxu1 }
 0x124   :  { %v189_v25 = vadd.f32 %v296_v20, %v188_v24 }
 0x126   :  { %v195_v26 = vsel %vm193_vm1, %v189_v25, -1e+30 }
 0x127   :  { %198 = vmax.xlane.f32.xlu0 %v195_v26 }
 0x192   :  { %v197_v27 = vpop.xlane.xlu0 %196 }
 0x193   :  { %v200_v28 = vsub.f32 %v194_v23, %v197_v27 }
 0x195   :  { %v202_v29 = vmul.f32 1.442695, %v200_v28 }
 0x197   :  { %297 = vpow2.f32 %v202_v29 }
 0x19a   :  { %v199_v30 = vpop.xlane.xlu0 %198 }
 0x19b   :  { %v201_v31 = vsub.f32 %v195_v26, %v199_v30 }
 0x19d   :  { %v298_v32 = vpop.eup %297  ;;  %v204_v33 = vmul.f32 1.442695, %v201_v31 }
 0x19e   :  { %206 = vadd.xlane.f32.xlu1 %v298_v32 }
 0x19f   :  { %299 = vpow2.f32 %v204_v33 }
 0x1a5   :  { %v300_v34 = vpop.eup %299 }
 0x1a6   :  { %208 = vadd.xlane.f32.xlu1 %v300_v34 }
 0x211   :  { %v207_v35 = vpop.xlane.xlu1 %206 }
 0x212   :  { %301 = vrcp.f32 %v207_v35 }
 0x218   :  { %v302_v36 = vpop.eup %301 }
 0x219   :  { %v212_v37 = vmul.f32 %v302_v36, %v298_v32  ;;  %v209_v38 = vpop.xlane.xlu1 %208 }
 0x21a   :  { %303 = vrcp.f32 %v209_v38 }
 0x21b   :  { %214 = vst [vmem:[#allocation8] sm:$0xff] %v212_v37 }
 0x220   :  { %v304_v39 = vpop.eup %303 }
 0x221   :  { %v213_v40 = vmul.f32 %v304_v39, %v300_v34 }
 0x223   :  { %215 = vst [vmem:[#allocation8 + $0x8] sm:$0xff] %v213_v40 }
 0x224   :  { %228 = dma.vmem_to_hbm [thread:$0]  %s221_s4, 256, %s223_s13, [#allocation4], %s413_s14, %s413_s14, %s414_s15  }
 0x225   :  { %405 = dma.done.wait [#allocation4], 256  }
 0x226   :  { %406 = vsyncadd [#allocation4], 4294967040 }
 0x227   :  { %233 = vsyncpa [#allocation3], 1 }
 0x228   :  { %234 = vsyncpa [#allocation6], 1 }
 0x229   :  { %235 = vsyncpa [#allocation4], 1 }

</bundles_post_ra>
